<compile_context>
chip_gen: v5e
topology: v5e:2x2
jax: 0.10.0
libtpu: 0.0.40
codegen_flags: <defaults>
</compile_context>

<pallas_src>
import numpy as np
import jax
import jax.numpy as jnp
from jax.experimental import pallas as pl
from jax.experimental.pallas import tpu as pltpu


def _round_up(x: int, m: int) -> int:
    return ((x + m - 1) // m) * m


def mlp_agent_kernel(obs_ref, act_ref, w1_ref, b1_ref, w2_ref, b2_ref, scores_ref):
    """One T-tile of:  scores += actions[:, tile] @ (relu(obs[tile] @ W1^T + b1) @ W2^T + b2)."""
    t = pl.program_id(0)

    # fc_1 + ReLU : (tT, D) @ (D, M) -> (tT, M)
    z1 = jnp.maximum(
        jnp.dot(obs_ref[...], w1_ref[...], preferred_element_type=jnp.float32)
        + b1_ref[...],
        0.0,
    )
    # fc_2 : (tT, M) @ (M, O_pad) -> (tT, O_pad)
    y = jnp.dot(z1, w2_ref[...], preferred_element_type=jnp.float32) + b2_ref[...]
    # action scoring : (A, tT) @ (tT, O_pad) -> (A, O_pad)
    contrib = jnp.dot(act_ref[...], y, preferred_element_type=jnp.float32)

    # scores block is resident across the (arbitrary) T axis -> accumulate in place.
    @pl.when(t == 0)
    def _():
        scores_ref[...] = contrib

    @pl.when(t != 0)
    def _():
        scores_ref[...] += contrib


def mlp_reinforce_agent_forward(observations, actions, agent_state, params, *, t_tile=512):
    """Pallas implementation of MLPReinforceAgent.forward.

    observations : (T, D)  float32   (PyTorch's .squeeze() makes a leading batch=1 a no-op)
    actions      : (A, T)  float32
    agent_state  : ()      passed through untouched
    params       : w1_t (D, M), b1 (1, M), w2_t (M, O), b2 (1, O)   (pre-transposed nn.Linear)
    """
    obs = jnp.asarray(observations, jnp.float32)
    act = jnp.asarray(actions, jnp.float32)
    T, D = obs.shape
    A = act.shape[0]

    w1_t = jnp.asarray(params["w1_t"], jnp.float32)   # (D, M)
    b1 = jnp.asarray(params["b1"], jnp.float32)       # (1, M)
    w2_t = jnp.asarray(params["w2_t"], jnp.float32)   # (M, O)
    b2 = jnp.asarray(params["b2"], jnp.float32)       # (1, O)
    M = w1_t.shape[1]
    O = w2_t.shape[1]

    # Lane-dense output: pad output dim to a multiple of 128 (zero columns, sliced off below).
    O_pad = _round_up(max(O, 128), 128)
    if O_pad != O:
        w2_t = jnp.pad(w2_t, ((0, 0), (0, O_pad - O)))
        b2 = jnp.pad(b2, ((0, 0), (0, O_pad - O)))

    # Sequence tiling. A single full-extent tile for small T; otherwise tiles of `t_tile`
    # (multiple of 128 so the (A, tT) actions block last dim is layout-legal). Padded obs
    # rows contribute nothing because the matching padded actions columns are zero.
    if T <= t_tile:
        tt, T_pad = T, T
    else:
        assert t_tile % 128 == 0
        tt = t_tile
        T_pad = _round_up(T, tt)
    if T_pad != T:
        obs = jnp.pad(obs, ((0, T_pad - T), (0, 0)))
        act = jnp.pad(act, ((0, 0), (0, T_pad - T)))

    grid = (T_pad // tt,)

    scores_padded = pl.pallas_call(
        mlp_agent_kernel,
        out_shape=jax.ShapeDtypeStruct((A, O_pad), jnp.float32),
        grid_spec=pltpu.PrefetchScalarGridSpec(
            num_scalar_prefetch=0,
            grid=grid,
            in_specs=[
                pl.BlockSpec((tt, D), lambda t: (t, 0)),      # observations tile (streamed)
                pl.BlockSpec((A, tt), lambda t: (0, t)),      # actions tile (streamed)
                pl.BlockSpec((D, M), lambda t: (0, 0)),       # W1^T (resident)
                pl.BlockSpec((1, M), lambda t: (0, 0)),       # b1   (resident)
                pl.BlockSpec((M, O_pad), lambda t: (0, 0)),   # W2^T (resident, lane-padded)
                pl.BlockSpec((1, O_pad), lambda t: (0, 0)),   # b2   (resident, lane-padded)
            ],
            out_specs=pl.BlockSpec((A, O_pad), lambda t: (0, 0)),  # resident accumulator
        ),
        compiler_params=pltpu.CompilerParams(
            dimension_semantics=("arbitrary",),   # reduction over T
        ),
    )(obs, act, w1_t, b1, w2_t, b2)

    scores = scores_padded[:, :O]
    return scores, agent_state


def reference_forward(observations, actions, agent_state, params):
    """Pure-JAX reference mirroring the PyTorch forward exactly."""
    z1 = jnp.maximum(observations @ params["w1_t"] + params["b1"], 0.0)
    y = z1 @ params["w2_t"] + params["b2"]
    scores = actions @ y
    return scores, agent_state


if __name__ == "__main__":
    # Small shapes consistent with the module (input_dim -> hidden_dim_mlp -> output_dim).
    D = 128    # input_dim
    M = 256    # hidden_dim_mlp
    O = 64     # output_dim (deliberately < 128 to exercise lane padding + slice-back)
    T = 8      # number of observation rows (batch squeezed away, as in forward())
    A = 16     # number of candidate actions

    key = jax.random.PRNGKey(0)
    ks = jax.random.split(key, 8)

    # nn.Linear convention: weight is (out_features, in_features).
    w1 = jax.random.normal(ks[0], (M, D), jnp.float32) * 0.05   # fc_1.weight
    b1 = jax.random.normal(ks[1], (M,), jnp.float32) * 0.05     # fc_1.bias
    w2 = jax.random.normal(ks[2], (O, M), jnp.float32) * 0.05   # fc_2.weight
    b2 = jax.random.normal(ks[3], (O,), jnp.float32) * 0.05     # fc_2.bias

    params = dict(
        w1_t=w1.T, b1=b1[None, :],   # (D, M), (1, M)
        w2_t=w2.T, b2=b2[None, :],   # (M, O), (1, O)
    )

    agent_state = ()   # MLPReinforceAgent.get_initial_state() returns ()

    # Case 1: tiny sequence -> single grid step, full-extent tiles.
    obs = jax.random.normal(ks[4], (T, D), jnp.float32)
    act = jax.random.normal(ks[5], (A, T), jnp.float32)
    scores, state_out = mlp_reinforce_agent_forward(obs, act, agent_state, params)
    jax.block_until_ready(scores)
    scores_ref, _ = reference_forward(obs, act, agent_state, params)
    np.testing.assert_allclose(np.asarray(scores), np.asarray(scores_ref),
                               rtol=5e-5, atol=5e-5)
    assert state_out == agent_state

    # Case 2: longer, non-tile-aligned sequence -> exercises T tiling, zero-padding and
    # the in-place accumulation across the "arbitrary" grid axis.
    T2 = 200
    obs2 = jax.random.normal(ks[6], (T2, D), jnp.float32)
    act2 = jax.random.normal(ks[7], (A, T2), jnp.float32)
    scores2, _ = mlp_reinforce_agent_forward(obs2, act2, agent_state, params, t_tile=128)
    jax.block_until_ready(scores2)
    scores2_ref, _ = reference_forward(obs2, act2, agent_state, params)
    np.testing.assert_allclose(np.asarray(scores2), np.asarray(scores2_ref),
                               rtol=5e-5, atol=5e-5)

    print("KERNEL_OK")
</pallas_src>

<mosaic_0001>
module attributes {stable_mosaic.version = 11 : i64} {
  func.func @mlp_agent_kernel(%arg0: i32, %arg1: memref<8x128xf32, #tpu.memory_space<vmem>>, %arg2: memref<16x8xf32, #tpu.memory_space<vmem>>, %arg3: memref<128x256xf32, #tpu.memory_space<vmem>>, %arg4: memref<1x256xf32, #tpu.memory_space<vmem>>, %arg5: memref<256x128xf32, #tpu.memory_space<vmem>>, %arg6: memref<1x128xf32, #tpu.memory_space<vmem>>, %arg7: memref<16x128xf32, #tpu.memory_space<vmem>>) attributes {dimension_semantics = [#tpu.dimension_semantics<arbitrary>], iteration_bounds = array<i64: 1>, scalar_prefetch = 0 : i64, scratch_operands = 0 : i64, tpu.core_type = #tpu.core_type<tc>, window_params = [{transform_indices = @transform_0, window_bounds = array<i64: 8, 128>}, {transform_indices = @transform_1, window_bounds = array<i64: 16, 8>}, {pipeline_mode = #tpu.pipeline_mode<synchronous>, transform_indices = @transform_2, window_bounds = array<i64: 128, 256>}, {pipeline_mode = #tpu.pipeline_mode<synchronous>, transform_indices = @transform_3, window_bounds = array<i64: 1, 256>}, {pipeline_mode = #tpu.pipeline_mode<synchronous>, transform_indices = @transform_4, window_bounds = array<i64: 256, 128>}, {pipeline_mode = #tpu.pipeline_mode<synchronous>, transform_indices = @transform_5, window_bounds = array<i64: 1, 128>}, {pipeline_mode = #tpu.pipeline_mode<synchronous>, transform_indices = @transform_6, window_bounds = array<i64: 16, 128>}]} {
    %c0 = arith.constant 0 : index
    %c0_0 = arith.constant 0 : index
    %0 = vector.load %arg1[%c0, %c0_0] : memref<8x128xf32, #tpu.memory_space<vmem>>, vector<8x128xf32>
    %c0_1 = arith.constant 0 : index
    %c0_2 = arith.constant 0 : index
    %1 = vector.load %arg3[%c0_1, %c0_2] : memref<128x256xf32, #tpu.memory_space<vmem>>, vector<128x256xf32>
    %cst = arith.constant dense<0.000000e+00> : vector<8x256xf32>
    %2 = tpu.matmul %0, %1, %cst {dimension_numbers = #tpu.dot_dimension_numbers<[1], [0], [0], [1], [0, 0, 1, 1], [], []>} : vector<8x128xf32>, vector<128x256xf32>, vector<8x256xf32> -> vector<8x256xf32>
    %c0_3 = arith.constant 0 : index
    %c0_4 = arith.constant 0 : index
    %3 = vector.load %arg4[%c0_3, %c0_4] : memref<1x256xf32, #tpu.memory_space<vmem>>, vector<1x256xf32>
    %4 = vector.broadcast %3 : vector<1x256xf32> to vector<8x256xf32>
    %5 = arith.addf %2, %4 : vector<8x256xf32>
    %cst_5 = arith.constant 0.000000e+00 : f32
    %6 = vector.broadcast %cst_5 : f32 to vector<8x256xf32>
    %7 = arith.maximumf %5, %6 : vector<8x256xf32>
    %c0_6 = arith.constant 0 : index
    %c0_7 = arith.constant 0 : index
    %8 = vector.load %arg5[%c0_6, %c0_7] : memref<256x128xf32, #tpu.memory_space<vmem>>, vector<256x128xf32>
    %cst_8 = arith.constant dense<0.000000e+00> : vector<8x128xf32>
    %9 = tpu.matmul %7, %8, %cst_8 {dimension_numbers = #tpu.dot_dimension_numbers<[1], [0], [0], [1], [0, 0, 1, 1], [], []>} : vector<8x256xf32>, vector<256x128xf32>, vector<8x128xf32> -> vector<8x128xf32>
    %c0_9 = arith.constant 0 : index
    %c0_10 = arith.constant 0 : index
    %10 = vector.load %arg6[%c0_9, %c0_10] : memref<1x128xf32, #tpu.memory_space<vmem>>, vector<1x128xf32>
    %11 = vector.broadcast %10 : vector<1x128xf32> to vector<8x128xf32>
    %12 = arith.addf %9, %11 : vector<8x128xf32>
    %c0_11 = arith.constant 0 : index
    %c0_12 = arith.constant 0 : index
    %13 = vector.load %arg2[%c0_11, %c0_12] : memref<16x8xf32, #tpu.memory_space<vmem>>, vector<16x8xf32>
    %cst_13 = arith.constant dense<0.000000e+00> : vector<16x128xf32>
    %14 = tpu.matmul %13, %12, %cst_13 {dimension_numbers = #tpu.dot_dimension_numbers<[1], [0], [0], [1], [0, 0, 1, 1], [], []>} : vector<16x8xf32>, vector<8x128xf32>, vector<16x128xf32> -> vector<16x128xf32>
    %c0_i32 = arith.constant 0 : i32
    %15 = arith.cmpi eq, %arg0, %c0_i32 : i32
    %16 = arith.extui %15 : i1 to i32
    %c0_i32_14 = arith.constant 0 : i32
    %17 = arith.cmpi ne, %16, %c0_i32_14 : i32
    scf.if %17 {
      %c0_17 = arith.constant 0 : index
      %c0_18 = arith.constant 0 : index
      %21 = vector.load %arg7[%c0_17, %c0_18] : memref<16x128xf32, #tpu.memory_space<vmem>>, vector<16x128xf32>
      tpu.vector_store %arg7[%c0_17, %c0_18], %14 {strides = array<i32>} : memref<16x128xf32, #tpu.memory_space<vmem>>, vector<16x128xf32>,
    } else {
    }
    %c0_i32_15 = arith.constant 0 : i32
    %18 = arith.cmpi ne, %arg0, %c0_i32_15 : i32
    %19 = arith.extui %18 : i1 to i32
    %c0_i32_16 = arith.constant 0 : i32
    %20 = arith.cmpi ne, %19, %c0_i32_16 : i32
    scf.if %20 {
      %c0_17 = arith.constant 0 : index
      %c0_18 = arith.constant 0 : index
      %21 = vector.load %arg7[%c0_17, %c0_18] : memref<16x128xf32, #tpu.memory_space<vmem>>, vector<16x128xf32>
      %22 = arith.addf %21, %14 : vector<16x128xf32>
      %c0_19 = arith.constant 0 : index
      %c0_20 = arith.constant 0 : index
      %23 = vector.load %arg7[%c0_19, %c0_20] : memref<16x128xf32, #tpu.memory_space<vmem>>, vector<16x128xf32>
      tpu.vector_store %arg7[%c0_19, %c0_20], %22 {strides = array<i32>} : memref<16x128xf32, #tpu.memory_space<vmem>>, vector<16x128xf32>,
    } else {
    }
    return
  }
  func.func @transform_0(%arg0: i32) -> (i32, i32) {
    %c0_i32 = arith.constant 0 : i32
    %c0_i32_0 = arith.constant 0 : i32
    return %arg0, %c0_i32 : i32, i32
  }
  func.func @transform_1(%arg0: i32) -> (i32, i32) {
    %c0_i32 = arith.constant 0 : i32
    %c0_i32_0 = arith.constant 0 : i32
    return %c0_i32, %arg0 : i32, i32
  }
  func.func @transform_2(%arg0: i32) -> (i32, i32) {
    %c0_i32 = arith.constant 0 : i32
    %c0_i32_0 = arith.constant 0 : i32
    %c0_i32_1 = arith.constant 0 : i32
    return %c0_i32, %c0_i32_0 : i32, i32
  }
  func.func @transform_3(%arg0: i32) -> (i32, i32) {
    %c0_i32 = arith.constant 0 : i32
    %c0_i32_0 = arith.constant 0 : i32
    %c0_i32_1 = arith.constant 0 : i32
    return %c0_i32, %c0_i32_0 : i32, i32
  }
  func.func @transform_4(%arg0: i32) -> (i32, i32) {
    %c0_i32 = arith.constant 0 : i32
    %c0_i32_0 = arith.constant 0 : i32
    %c0_i32_1 = arith.constant 0 : i32
    return %c0_i32, %c0_i32_0 : i32, i32
  }
  func.func @transform_5(%arg0: i32) -> (i32, i32) {
    %c0_i32 = arith.constant 0 : i32
    %c0_i32_0 = arith.constant 0 : i32
    %c0_i32_1 = arith.constant 0 : i32
    return %c0_i32, %c0_i32_0 : i32, i32
  }
  func.func @transform_6(%arg0: i32) -> (i32, i32) {
    %c0_i32 = arith.constant 0 : i32
    %c0_i32_0 = arith.constant 0 : i32
    %c0_i32_1 = arith.constant 0 : i32
    return %c0_i32, %c0_i32_0 : i32, i32
  }
}

</mosaic_0001>

<bundles_post_ra>
// kernel: tpu_custom_call.1
= control target key start
LH: loop header
LB: loop body
LE: loop exit
PB: predicated region body
PF: predicated region fallthrough
CT: control target
= control target key end

     0   :  { %11 = vsyncpa [#allocation3], 0  ;;  %s442_s0 = inlined_call_operand.vmem [shape: f32[8,128], index: 0, kind: input, shape index: {}]   ;;  %s443_s1 = inlined_call_operand.vmem [shape: f32[16,8], index: 1, kind: input, shape index: {}]   ;;  %s444_s2 = inlined_call_operand.hbm [shape: f32[128,256], index: 2, kind: input, shape index: {}]   ;;  %s445_s3 = inlined_call_operand.vmem [shape: f32[1,256], index: 3, kind: input, shape index: {}]   ;;  %s446_s4 = inlined_call_operand.hbm [shape: f32[256,128], index: 4, kind: input, shape index: {}]   ;;  %s447_s5 = inlined_call_operand.vmem [shape: f32[1,128], index: 5, kind: input, shape index: {}]   ;;  %s448_s6 = inlined_call_operand.hbm [shape: f32[16,128], index: 6, kind: output, shape index: {}]  }
   0x1   :  { %12 = vsyncpa [#allocation6], 0 }
   0x2   :  { %13 = vsyncpa [#allocation4], 0  ;;  %s22_s23 = sshll.u32 %s444_s2, 4  ;;  %s370_s24 = smov [#allocation2]   ;;  %s23_s23 = int_to_ptr.hbm [resolvable:$true] %s22_s23 }
   0x3   :  { %s24_s25 = sshll.u32 %s370_s24, 4  ;;  %s37_s28 = sshll.u32 %s446_s4, 4  ;;  %s25_s25 = int_to_ptr.vmem [resolvable:$true] %s24_s25  ;;  %s38_s28 = int_to_ptr.hbm [resolvable:$true] %s37_s28 }
   0x4   :  { %s371_s29 = smov 256   ;;  %s372_s30 = smov 16  }
   0x5   :  { %30 = dma.hbm_to_vmem [thread:$0]  %s23_s23, 4096, %s25_s25, [#allocation3], %s371_s29, %s371_s29, %s372_s30  }
   0x6   :  { %s373_s7 = smov [#allocation5]   ;;  %s374_s9 = smov 128  }
   0x7   :  { %s39_s8 = sshll.u32 %s373_s7, 4  ;;  %s375_s10 = smov 8   ;;  %s40_s8 = int_to_ptr.vmem [resolvable:$true] %s39_s8 }
   0x8   :  { %45 = dma.hbm_to_vmem [thread:$0]  %s38_s28, 4096, %s40_s8, [#allocation6], %s374_s9, %s374_s9, %s375_s10  }
   0x9   :  { %364 = dma.done.wait [#allocation3], 4096  }
   0xa   :  { %365 = vsyncadd [#allocation3], 4294963200 }
   0xb   :  { %366 = dma.done.wait [#allocation6], 4096  }
   0xc   :  { %367 = vsyncadd [#allocation6], 4294963200  ;;  %v87_v0 = vld [vmem:[#allocation2 + $0xf0] sm:$0xff]  ;;  %v85_v1 = vld [vmem:[#allocation2 + $0xe0] sm:$0xff]  ;;  %vm215_vm0 = vcmask 64512   ;;  %s376_s17 = smov [#allocation7]  }
   0xd   :  { %v88_v2 = vld [vmem:[#allocation2 + $0xf8] sm:$0xff]  ;;  %95 = vmatpush.msra.mxu0 %v87_v0  ;;  %v86_v3 = vld [vmem:[#allocation2 + $0xe8] sm:$0xff]  ;;  %v83_v4 = vld [vmem:[#allocation2 + $0xd0] sm:$0xff]  ;;  %s265_s18 = sshll.u32 %s376_s17, 4  ;;  %s267_s20 = sshll.u32 %s448_s6, 4  ;;  %s266_s18 = int_to_ptr.vmem [resolvable:$true] %s265_s18  ;;  %s268_s20 = int_to_ptr.hbm [resolvable:$true] %s267_s20 }
   0xe   :  { %115 = vmatpush.msra.mxu1 %v88_v2  ;;  %v84_v5 = vld [vmem:[#allocation2 + $0xd8] sm:$0xff]  ;;  %v81_v6 = vld [vmem:[#allocation2 + $0xc0] sm:$0xff]  ;;  %v82_v7 = vld [vmem:[#allocation2 + $0xc8] sm:$0xff] }
   0xf   :  { %96 = vmatpush.msra.mxu0 %v85_v1  ;;  %v79_v8 = vld [vmem:[#allocation2 + $0xb0] sm:$0xff]  ;;  %v80_v9 = vld [vmem:[#allocation2 + $0xb8] sm:$0xff]  ;;  %v77_v10 = vld [vmem:[#allocation2 + $0xa0] sm:$0xff] }
  0x10   :  { %116 = vmatpush.msra.mxu1 %v86_v3  ;;  %v78_v11 = vld [vmem:[#allocation2 + $0xa8] sm:$0xff]  ;;  %v75_v12 = vld [vmem:[#allocation2 + $0x90] sm:$0xff]  ;;  %v76_v13 = vld [vmem:[#allocation2 + $0x98] sm:$0xff] }
  0x11   :  { %97 = vmatpush.msra.mxu0 %v83_v4  ;;  %v152_v14 = vld [vmem:[#allocation5 + $0x78] sm:$0xff]  ;;  %v151_v15 = vld [vmem:[#allocation5 + $0x70] sm:$0xff]  ;;  %v73_v17 = vld [vmem:[#allocation2 + $0x80] sm:$0xff] }
  0x12   :  { %117 = vmatpush.msra.mxu1 %v84_v5  ;;  %v168_v16 = vld [vmem:[#allocation5 + $0xf8] sm:$0xff]  ;;  %v74_v18 = vld [vmem:[#allocation2 + $0x88] sm:$0xff]  ;;  %173 = vmatpush.msra.mxu2 %v152_v14  ;;  %v167_v19 = vld [vmem:[#allocation5 + $0xf0] sm:$0xff] }
  0x13   :  { %98 = vmatpush.msra.mxu0 %v81_v6  ;;  %193 = vmatpush.msra.mxu3 %v168_v16  ;;  %v150_v20 = vld [vmem:[#allocation5 + $0x68] sm:$0xff]  ;;  %v71_v22 = vld [vmem:[#allocation2 + $0x70] sm:$0xff]  ;;  %v72_v23 = vld [vmem:[#allocation2 + $0x78] sm:$0xff] }
  0x14   :  { %118 = vmatpush.msra.mxu1 %v82_v7  ;;  %v166_v21 = vld [vmem:[#allocation5 + $0xe8] sm:$0xff]  ;;  %174 = vmatpush.msra.mxu2 %v151_v15  ;;  %v149_v24 = vld [vmem:[#allocation5 + $0x60] sm:$0xff]  ;;  %v148_v28 = vld [vmem:[#allocation5 + $0x58] sm:$0xff] }
  0x15   :  { %99 = vmatpush.msra.mxu0 %v79_v8  ;;  %194 = vmatpush.msra.mxu3 %v167_v19  ;;  %v165_v25 = vld [vmem:[#allocation5 + $0xe0] sm:$0xff]  ;;  %v70_v27 = vld [vmem:[#allocation2 + $0x68] sm:$0xff]  ;;  %v164_v29 = vld [vmem:[#allocation5 + $0xd8] sm:$0xff] }
  0x16   :  { %119 = vmatpush.msra.mxu1 %v80_v9  ;;  %v69_v26 = vld [vmem:[#allocation2 + $0x60] sm:$0xff]  ;;  %175 = vmatpush.msra.mxu2 %v150_v20  ;;  %v67_v30 = vld [vmem:[#allocation2 + $0x50] sm:$0xff]  ;;  %v68_v31 = vld [vmem:[#allocation2 + $0x58] sm:$0xff] }
  0x17   :  { %100 = vmatpush.msra.mxu0 %v77_v10  ;;  %195 = vmatpush.msra.mxu3 %v166_v21  ;;  %v147_v32 = vld [vmem:[#allocation5 + $0x50] sm:$0xff]  ;;  %v65_v34 = vld [vmem:[#allocation2 + $0x40] sm:$0xff]  ;;  %v66_v35 = vld [vmem:[#allocation2 + $0x48] sm:$0xff] }
  0x18   :  { %120 = vmatpush.msra.mxu1 %v78_v11  ;;  %176 = vmatpush.msra.mxu2 %v149_v24  ;;  %v163_v33 = vld [vmem:[#allocation5 + $0xd0] sm:$0xff]  ;;  %v146_v36 = vld [vmem:[#allocation5 + $0x48] sm:$0xff]  ;;  %v64_v39 = vld [vmem:[#allocation2 + $0x38] sm:$0xff] }
  0x19   :  { %101 = vmatpush.msra.mxu0 %v75_v12  ;;  %196 = vmatpush.msra.mxu3 %v165_v25  ;;  %v162_v37 = vld [vmem:[#allocation5 + $0xc8] sm:$0xff]  ;;  %v63_v38 = vld [vmem:[#allocation2 + $0x30] sm:$0xff]  ;;  %v145_v40 = vld [vmem:[#allocation5 + $0x40] sm:$0xff] }
  0x1a   :  { %121 = vmatpush.msra.mxu1 %v76_v13  ;;  %177 = vmatpush.msra.mxu2 %v148_v28  ;;  %v161_v41 = vld [vmem:[#allocation5 + $0xc0] sm:$0xff]  ;;  %v62_v43 = vld [vmem:[#allocation2 + $0x28] sm:$0xff]  ;;  %v144_v44 = vld [vmem:[#allocation5 + $0x38] sm:$0xff] }
  0x1b   :  { %102 = vmatpush.msra.mxu0 %v73_v17  ;;  %197 = vmatpush.msra.mxu3 %v164_v29  ;;  %v61_v42 = vld [vmem:[#allocation2 + $0x20] sm:$0xff]  ;;  %v160_v45 = vld [vmem:[#allocation5 + $0xb8] sm:$0xff]  ;;  %v59_v46 = vld [vmem:[#allocation2 + $0x10] sm:$0xff] }
  0x1c   :  { %122 = vmatpush.msra.mxu1 %v74_v18  ;;  %178 = vmatpush.msra.mxu2 %v147_v32  ;;  %v60_v47 = vld [vmem:[#allocation2 + $0x18] sm:$0xff]  ;;  %v143_v48 = vld [vmem:[#allocation5 + $0x30] sm:$0xff]  ;;  %v57_v50 = vld [vmem:[#allocation2] sm:$0xff] }
  0x1d   :  { %103 = vmatpush.msra.mxu0 %v71_v22  ;;  %198 = vmatpush.msra.mxu3 %v163_v33  ;;  %v159_v49 = vld [vmem:[#allocation5 + $0xb0] sm:$0xff]  ;;  %v58_v51 = vld [vmem:[#allocation2 + $0x8] sm:$0xff]  ;;  %v56_v52 = vld [vmem:[%s442_s0] sm:$0xff] }
  0x1e   :  { %123 = vmatpush.msra.mxu1 %v72_v23  ;;  %179 = vmatpush.msra.mxu2 %v146_v36  ;;  %v142_v53 = vld [vmem:[#allocation5 + $0x28] sm:$0xff]  ;;  %v141_v55 = vld [vmem:[#allocation5 + $0x20] sm:$0xff]  ;;  %v140_v57 = vld [vmem:[#allocation5 + $0x18] sm:$0xff] }
  0x1f   :  { %104 = vmatpush.msra.mxu0 %v69_v26  ;;  %199 = vmatpush.msra.mxu3 %v162_v37  ;;  %v158_v54 = vld [vmem:[#allocation5 + $0xa8] sm:$0xff]  ;;  %v157_v56 = vld [vmem:[#allocation5 + $0xa0] sm:$0xff]  ;;  %v139_v58 = vld [vmem:[#allocation5 + $0x10] sm:$0xff] }
  0x20   :  { %124 = vmatpush.msra.mxu1 %v70_v27  ;;  %180 = vmatpush.msra.mxu2 %v145_v40  ;;  %v156_v59 = vld [vmem:[#allocation5 + $0x98] sm:$0xff]  ;;  %v138_v60 = vld [vmem:[#allocation5 + $0x8] sm:$0xff]  ;;  %v155_v61 = vld [vmem:[#allocation5 + $0x90] sm:$0xff] }
  0x21   :  { %105 = vmatpush.msra.mxu0 %v67_v30  ;;  %200 = vmatpush.msra.mxu3 %v161_v41  ;;  %v137_v62 = vld [vmem:[#allocation5] sm:$0xff]  ;;  %v154_v63 = vld [vmem:[#allocation5 + $0x88] sm:$0xff] }
  0x22   :  { %125 = vmatpush.msra.mxu1 %v68_v31  ;;  %181 = vmatpush.msra.mxu2 %v144_v44  ;;  %v153_v0 = vld [vmem:[#allocation5 + $0x80] sm:$0xff]  ;;  %v214_v16 = vld [vmem:[%s443_s1 + $0x8] sm:$0xff] }
  0x23   :  { %106 = vmatpush.msra.mxu0 %v65_v34  ;;  %201 = vmatpush.msra.mxu3 %v160_v45  ;;  %v89_v1 = vld [vmem:[%s445_s3] sm:$0x3] }
  0x24   :  { %126 = vmatpush.msra.mxu1 %v66_v35  ;;  %182 = vmatpush.msra.mxu2 %v143_v48  ;;  %v91_v2 = vperm.slane %v89_v1, 0  ;;  %v92_v3 = vperm.slane %v89_v1, 1  ;;  %v291_v10 = vld [vmem:[%s447_s5] ss:$0 sm:$0xff] }
  0x25   :  { %107 = vmatpush.msra.mxu0 %v63_v38  ;;  %202 = vmatpush.msra.mxu3 %v159_v49  ;;  %v213_v15 = vld [vmem:[%s443_s1] sm:$0xff] }
  0x26   :  { %127 = vmatpush.msra.mxu1 %v64_v39  ;;  %183 = vmatpush.msra.mxu2 %v142_v53 }
  0x27   :  { %108 = vmatpush.msra.mxu0 %v61_v42  ;;  %203 = vmatpush.msra.mxu3 %v158_v54 }
  0x28   :  { %128 = vmatpush.msra.mxu1 %v62_v43  ;;  %184 = vmatpush.msra.mxu2 %v141_v55 }
  0x29   :  { %109 = vmatpush.msra.mxu0 %v59_v46  ;;  %204 = vmatpush.msra.mxu3 %v157_v56 }
  0x2a   :  { %129 = vmatpush.msra.mxu1 %v60_v47  ;;  %185 = vmatpush.msra.mxu2 %v140_v57 }
  0x2b   :  { %110 = vmatpush.msra.mxu0 %v57_v50  ;;  %205 = vmatpush.msra.mxu3 %v156_v59 }
  0x2c   :  { %130 = vmatpush.msra.mxu1 %v58_v51  ;;  %111 = vmatmul.f32.vlgmr.msra.gmra.mxu0 %v56_v52 }
  0x2d   :  { %131 = vmatmul.f32.vlgmr.msra.gmra.mxu1 %v56_v52  ;;  %186 = vmatpush.msra.mxu2 %v139_v58 }
  0x2e   :  { %206 = vmatpush.msra.mxu3 %v155_v61 }
  0x2f   :  { %187 = vmatpush.msra.mxu2 %v138_v60 }
  0x30   :  { %207 = vmatpush.msra.mxu3 %v154_v63 }
  0x31   :  { %188 = vmatpush.msra.mxu2 %v137_v62 }
  0x32   :  { %208 = vmatpush.msra.mxu3 %v153_v0 }
  0xa9   :  { %v112_v4 = vpop.f32.mrf.mxu0 }
  0xaa   :  { %v132_v5 = vpop.f32.mrf.mxu1  ;;  %v113_v6 = vadd.f32 %v112_v4, %v91_v2 }
  0xab   :  { %v133_v7 = vadd.f32 %v132_v5, %v92_v3 }
  0xac   :  { %v135_v8 = vmax.f32 %v113_v6, 0.0 }
  0xad   :  { %v136_v9 = vmax.f32 %v133_v7, 0.0 }
  0xae   :  { %189 = vmatmul.f32.vlgmr.msra.gmra.mxu2 %v135_v8 }
  0xaf   :  { %209 = vmatmul.f32.vlgmr.msra.gmra.mxu3 %v136_v9 }
 0x131   :  { %v190_v11 = vpop.f32.mrf.mxu2 }
 0x132   :  { %v210_v12 = vpop.f32.mrf.mxu3  ;;  %v191_v13 = vadd.f32 %v291_v10, %v190_v11 }
 0x134   :  { %v211_v14 = vadd.f32 %v210_v12, %v191_v13 }
 0x136   :  { %237 = vmatpush.msrb.mxu0 %v211_v14  ;;  %283 = vmatpush.msrb.mxu1 %v211_v14 }
 0x137   :  { %281 = vmatmul.msk.f32.vlgmr.msrb.gmra.mxu0 %vm215_vm0, %v213_v15  ;;  %282 = vmatmul.msk.f32.vlgmr.msrb.gmra.mxu1 %vm215_vm0, %v214_v16 }
 0x1b4   :  { %v239_v17 = vpop.f32.mrf.mxu0  ;;  %v242_v18 = vpop.f32.mrf.mxu1 }
 0x1b5   :  { %249 = vst [vmem:[#allocation7] sm:$0xff] %v239_v17 }
 0x1b6   :  { %250 = vst [vmem:[#allocation7 + $0x8] sm:$0xff] %v242_v18 }
 0x1b7   :  { %273 = dma.vmem_to_hbm [thread:$0]  %s266_s18, 256, %s268_s20, [#allocation4], %s374_s9, %s374_s9, %s375_s10  }
 0x1b8   :  { %368 = dma.done.wait [#allocation4], 256  }
 0x1b9   :  { %369 = vsyncadd [#allocation4], 4294967040 }
 0x1ba   :  { %278 = vsyncpa [#allocation3], 1 }
 0x1bb   :  { %279 = vsyncpa [#allocation6], 1 }
 0x1bc   :  { %280 = vsyncpa [#allocation4], 1 }

</bundles_post_ra>
